<compile_context>
chip_gen: v5e
topology: v5e:2x2
jax: 0.10.0
libtpu: 0.0.40
codegen_flags: <defaults>
</compile_context>

<pallas_src>
import numpy as np
import jax
import jax.numpy as jnp
from jax.experimental import pallas as pl
from jax.experimental.pallas import tpu as pltpu

EPS = 1e-6
_LANE = 128
MIN_K_FOR_PALLAS = 512  # below this the XLA fallback wins (masked sub-128
                        # stores + pallas_call fixed overhead dominate).


def _vnt_linear_kernel(x_ref, w_ref, o_ref):
    # x_ref: [1, C_in, TN]   w_ref: [C_out, C_in]   o_ref: [1, C_out, TN]
    # Pure channel mix on the MXU: contraction over C_in, no transpose of the
    # x tile (W is lhs), so no in-VMEM relayout copies around the dot.
    o_ref[0] = jnp.dot(
        w_ref[...], x_ref[0], preferred_element_type=jnp.float32
    ).astype(o_ref.dtype)


def _normalize_weight(weight, which_norm):
    w = weight.astype(jnp.float32)
    if which_norm == "softmax":
        return jax.nn.softmax(w, axis=1)
    # TODO(synk): like the PyTorch module, this can blow up if a weight row
    # sums to ~0 (no abs); semantics preserved on purpose.
    return w / (jnp.sum(w, axis=1, keepdims=True) + EPS)


def _round_up(x, m):
    return ((x + m - 1) // m) * m


def _cdiv(a, b):
    return -(-a // b)


def _sublane_tile(dtype_bytes):
    # VMEM sublane tile per dtype: f32 -> 8 rows, bf16 -> 16, int8/fp8 -> 32.
    return {4: 8, 2: 16, 1: 32}.get(int(dtype_bytes), 8)


def _device_info():
    """Returns (vmem_capacity_bytes, num_tensorcores_per_chip, is_v7x)."""
    vmem_cap = 128 << 20
    kind = ""
    try:
        kind = (jax.devices()[0].device_kind or "").lower()
    except Exception:
        pass
    try:
        vmem_cap = int(pltpu.get_tpu_info().vmem_capacity_bytes)
    except Exception:
        pass
    is_v7 = ("v7" in kind) or (vmem_cap <= (96 << 20))
    num_tc = 2 if is_v7 else 1
    return vmem_cap, num_tc, is_v7


def _choose_tile_n(k, c_in_p, c_out_p, dtype_bytes, b, num_tc, ws_budget_bytes):
    """Pick the lane tile TN.

    Step-target first: guarantee enough total grid steps that double-buffering
    overlaps (and both v7x TensorCores get work), derive a balanced tile from
    that, then clamp by the double-buffered VMEM working-set budget.
    """
    # Largest tn the working-set budget allows (2 buffers of padded x + out).
    per_lane = 2 * (c_in_p + c_out_p) * dtype_bytes
    tn_vmem = max(_LANE, (ws_budget_bytes // max(per_lane, 1)) // _LANE * _LANE)

    # Step target: >= ~4 steps per TensorCore across the whole grid.
    target_total_steps = 4 * num_tc
    k_steps_needed = max(1, _cdiv(target_total_steps, max(b, 1)))
    tn_steps = _round_up(_cdiv(k, k_steps_needed), _LANE)

    tn = min(tn_vmem, tn_steps, _round_up(k, _LANE))
    tn = max(tn, _LANE)

    # Rebalance so the tail tile is not a tiny masked-store step carrying the
    # full ~0.35 us per-step overhead.
    n_steps = _cdiv(k, tn)
    tn = _round_up(_cdiv(k, n_steps), _LANE)
    return int(tn)


def vnt_linear(x, weight, which_norm="softmax", tile_n=None,
               min_k_for_pallas=MIN_K_FOR_PALLAS):
    """x: [B, C_in, 3, N_samples, ...], weight: [C_out, C_in]."""
    c_in = x.shape[1]
    assert c_in == weight.shape[1], (
        f"In channels {c_in} must equal {weight.shape[1]}")
    c_out = weight.shape[0]
    b = x.shape[0]
    rest = x.shape[2:]
    k = int(np.prod(rest)) if rest else 1

    # One-time (tiny) weight normalization, hoisted out of the hot loop.
    compute_dtype = jnp.bfloat16 if x.dtype == jnp.bfloat16 else jnp.float32
    w_norm = _normalize_weight(weight, which_norm).astype(compute_dtype)

    # Free reshape into the batched channel-first matmul layout [B, C_in, K].
    x3 = x.reshape(b, c_in, k)

    # Small-K fallback: XLA beats the kernel here (lane width < 128 -> masked
    # partial stores; pallas_call fixed overhead dominates a few-KiB problem).
    if k < min_k_for_pallas:
        out3 = jnp.einsum(
            "oi,bik->bok", w_norm, x3.astype(compute_dtype),
            preferred_element_type=jnp.float32).astype(x.dtype)
        return out3.reshape((b, c_out) + rest)

    dtype_bytes = jnp.dtype(x.dtype).itemsize
    w_bytes = jnp.dtype(compute_dtype).itemsize
    sub = _sublane_tile(dtype_bytes)
    c_in_p, c_out_p = _round_up(c_in, sub), _round_up(c_out, sub)

    vmem_cap, num_tc, is_v7 = _device_info()
    # Generation-aware working-set budget for double-buffered x + out blocks.
    ws_budget = (20 << 20) if is_v7 else (36 << 20)

    if tile_n is not None:
        tn = max(_LANE, (min(int(tile_n), _round_up(k, _LANE)) // _LANE) * _LANE)
    else:
        tn = _choose_tile_n(k, c_in_p, c_out_p, dtype_bytes, b, num_tc, ws_budget)
        # TODO(synk): if C_in ever grows >= ~1024, add a reduction grid axis
        # over C_in with an f32 accumulator instead of a full (C_in, TN) block.

    grid = (b, pl.cdiv(k, tn))

    # VMEM request: sublane-padded double-buffered blocks + 128-lane-padded
    # weight + margin for Mosaic internal scratch (no blanket 32-48 MiB ask;
    # stays well clear of v7x's 64 MiB/TC while letting v5e/v6e use big tiles).
    in_block = c_in_p * tn * dtype_bytes
    out_block = c_out_p * tn * dtype_bytes
    w_block = c_out_p * _round_up(c_in, _LANE) * w_bytes
    need = 2 * (in_block + out_block) + 2 * w_block + (4 << 20)
    vmem_limit = int(min(max(need, 16 << 20), vmem_cap // 2))

    out3 = pl.pallas_call(
        _vnt_linear_kernel,
        out_shape=jax.ShapeDtypeStruct((b, c_out, k), x.dtype),
        grid_spec=pltpu.PrefetchScalarGridSpec(
            num_scalar_prefetch=0,
            grid=grid,
            in_specs=[
                pl.BlockSpec((1, c_in, tn), lambda bi, ji: (bi, 0, ji)),
                pl.BlockSpec((c_out, c_in), lambda bi, ji: (0, 0)),
            ],
            out_specs=pl.BlockSpec((1, c_out, tn), lambda bi, ji: (bi, 0, ji)),
        ),
        compiler_params=pltpu.CompilerParams(
            dimension_semantics=("parallel", "parallel"),
            vmem_limit_bytes=vmem_limit,
        ),
    )(x3, w_norm)

    return out3.reshape((b, c_out) + rest)


def vnt_linear_ref(x, weight, which_norm="softmax"):
    # Pure-JAX mirror of the PyTorch forward:
    #   matmul(x.transpose(1,-1), W_norm.T).transpose(1,-1)
    w = _normalize_weight(weight, which_norm)
    xt = jnp.swapaxes(x, 1, -1)
    return jnp.swapaxes(jnp.matmul(xt, w.T), 1, -1)


if __name__ == "__main__":
    key = jax.random.PRNGKey(0)
    k_x, k_w, k_a, k_x2, k_w2, k_x3, k_x4 = jax.random.split(key, 7)

    # Case 1: Pallas path (K = 3*512 = 1536 >= 512), softmax normalization.
    B, C_IN, C_OUT, N = 2, 4, 8, 512
    x = jax.random.normal(k_x, (B, C_IN, 3, N), dtype=jnp.float32)
    # Deterministic parameter init (mirrors torch.rand + softmax in __init__).
    w_raw = jax.random.uniform(k_w, (C_OUT, C_IN), dtype=jnp.float32)
    weight = jax.nn.softmax(w_raw, axis=1)
    amplification = jax.random.normal(k_a, (1,))  # unused in forward (parity only)

    out = jax.block_until_ready(vnt_linear(x, weight, which_norm="softmax"))
    ref = vnt_linear_ref(x, weight, which_norm="softmax")
    assert out.shape == (B, C_OUT, 3, N), out.shape
    np.testing.assert_allclose(np.asarray(out), np.asarray(ref),
                               rtol=1e-5, atol=1e-5)

    # Case 2: forced Pallas at K = 210 (exercises the tail edge-masked block
    # and the sum-normalize branch).
    B2, C_IN2, C_OUT2, N2 = 2, 6, 10, 70
    x2 = jax.random.normal(k_x2, (B2, C_IN2, 3, N2), dtype=jnp.float32)
    w2 = jax.random.uniform(k_w2, (C_OUT2, C_IN2), dtype=jnp.float32)
    out2 = jax.block_until_ready(
        vnt_linear(x2, w2, which_norm="sum", min_k_for_pallas=0))
    ref2 = vnt_linear_ref(x2, w2, which_norm="sum")
    assert out2.shape == (B2, C_OUT2, 3, N2), out2.shape
    np.testing.assert_allclose(np.asarray(out2), np.asarray(ref2),
                               rtol=1e-5, atol=1e-5)

    # Case 3: small-K XLA fallback path with an extra trailing dim
    # ([B, C_in, 3, N_samples, M], K = 3*16*8 = 384 < 512).
    x3_in = jax.random.normal(k_x3, (B, C_IN, 3, 16, 8), dtype=jnp.float32)
    out3 = jax.block_until_ready(vnt_linear(x3_in, weight, which_norm="softmax"))
    ref3 = vnt_linear_ref(x3_in, weight, which_norm="softmax")
    assert out3.shape == (B, C_OUT, 3, 16, 8), out3.shape
    np.testing.assert_allclose(np.asarray(out3), np.asarray(ref3),
                               rtol=1e-5, atol=1e-5)

    # Case 4: B == 1, large K -> step-target splitting keeps several tiles
    # per TensorCore.
    x4 = jax.random.normal(k_x4, (1, C_IN, 3, 2048), dtype=jnp.float32)
    out4 = jax.block_until_ready(vnt_linear(x4, weight, which_norm="softmax"))
    ref4 = vnt_linear_ref(x4, weight, which_norm="softmax")
    assert out4.shape == (1, C_OUT, 3, 2048), out4.shape
    np.testing.assert_allclose(np.asarray(out4), np.asarray(ref4),
                               rtol=1e-5, atol=1e-5)

    print("KERNEL_OK")
</pallas_src>

<mosaic_0001>
module attributes {stable_mosaic.version = 11 : i64} {
  func.func @_vnt_linear_kernel(%arg0: i32, %arg1: i32, %arg2: memref<1x4x768xf32, #tpu.memory_space<vmem>>, %arg3: memref<8x4xf32, #tpu.memory_space<vmem>>, %arg4: memref<1x8x768xf32, #tpu.memory_space<vmem>>) attributes {dimension_semantics = [#tpu.dimension_semantics<parallel>, #tpu.dimension_semantics<parallel>], iteration_bounds = array<i64: 2, 2>, scalar_prefetch = 0 : i64, scratch_operands = 0 : i64, tpu.core_type = #tpu.core_type<tc>, window_params = [{transform_indices = @transform_0, window_bounds = array<i64: 1, 4, 768>}, {pipeline_mode = #tpu.pipeline_mode<synchronous>, transform_indices = @transform_1, window_bounds = array<i64: 8, 4>}, {transform_indices = @transform_2, window_bounds = array<i64: 1, 8, 768>}]} {
    %c0 = arith.constant 0 : index
    %c0_0 = arith.constant 0 : index
    %0 = vector.load %arg3[%c0, %c0_0] : memref<8x4xf32, #tpu.memory_space<vmem>>, vector<8x4xf32>
    %c0_1 = arith.constant 0 : index
    %c0_2 = arith.constant 0 : index
    %c0_3 = arith.constant 0 : index
    %1 = vector.load %arg2[%c0_1, %c0_2, %c0_3] : memref<1x4x768xf32, #tpu.memory_space<vmem>>, vector<1x4x768xf32>
    %2 = vector.shape_cast %1 : vector<1x4x768xf32> to vector<4x768xf32>
    %cst = arith.constant dense<0.000000e+00> : vector<8x768xf32>
    %3 = tpu.matmul %0, %2, %cst {dimension_numbers = #tpu.dot_dimension_numbers<[1], [0], [0], [1], [0, 0, 1, 1], [], []>} : vector<8x4xf32>, vector<4x768xf32>, vector<8x768xf32> -> vector<8x768xf32>
    %c0_4 = arith.constant 0 : index
    %c0_5 = arith.constant 0 : index
    %c0_6 = arith.constant 0 : index
    %4 = vector.load %arg4[%c0_4, %c0_5, %c0_6] : memref<1x8x768xf32, #tpu.memory_space<vmem>>, vector<1x8x768xf32>
    %5 = vector.shape_cast %4 : vector<1x8x768xf32> to vector<8x768xf32>
    %6 = vector.shape_cast %3 : vector<8x768xf32> to vector<1x8x768xf32>
    tpu.vector_store %arg4[%c0_4, %c0_5, %c0_6], %6 {strides = array<i32>} : memref<1x8x768xf32, #tpu.memory_space<vmem>>, vector<1x8x768xf32>,
    return
  }
  func.func @transform_0(%arg0: i32, %arg1: i32) -> (i32, i32, i32) {
    %c0_i32 = arith.constant 0 : i32
    %c0_i32_0 = arith.constant 0 : i32
    return %arg0, %c0_i32, %arg1 : i32, i32, i32
  }
  func.func @transform_1(%arg0: i32, %arg1: i32) -> (i32, i32) {
    %c0_i32 = arith.constant 0 : i32
    %c0_i32_0 = arith.constant 0 : i32
    %c0_i32_1 = arith.constant 0 : i32
    return %c0_i32, %c0_i32_0 : i32, i32
  }
  func.func @transform_2(%arg0: i32, %arg1: i32) -> (i32, i32, i32) {
    %c0_i32 = arith.constant 0 : i32
    %c0_i32_0 = arith.constant 0 : i32
    return %arg0, %c0_i32, %arg1 : i32, i32, i32
  }
}

</mosaic_0001>

<bundles_post_ra>
// kernel: tpu_custom_call.1
= control target key start
LH: loop header
LB: loop body
LE: loop exit
PB: predicated region body
PF: predicated region fallthrough
CT: control target
= control target key end

     0   :  { %7 = vsyncpa [#allocation3], 0  ;;  %s862_s0 = inlined_call_operand.hbm [shape: f32[2,4,1536], index: 0, kind: input, shape index: {}]   ;;  %s863_s1 = inlined_call_operand.vmem [shape: f32[8,4], index: 1, kind: input, shape index: {}]   ;;  %s864_s2 = inlined_call_operand.hbm [shape: f32[2,8,1536], index: 2, kind: output, shape index: {}]  }
   0x1   :  { %9 = vsyncpa [#allocation3 + $0x1], 0 }
   0x2   :  { %10 = vsyncpa [#allocation4], 0 }
   0x3   :  { %12 = vsyncpa [#allocation4 + $0x1], 0  ;;  %s698_s9 = smov 0   ;;  %s700_s10 = smov 0  }
   0x4   :  { %s702_s11 = smov 0   ;;  %s704_s12 = smov 0  }
   0x5   :  { %s706_s13 = smov 0   ;;  %s708_s14 = smov 0  }
   0x6   :  { %s710_s15 = smov 0   ;;  %s712_s16 = smov 0  }
   0x7 LB: > { %s449_s17 = sadd.s32 4294967295, %s681_s16   ;;  %s450_s18 = sadd.s32 4294967294, %s681_s16   ;;  %s681_s16 = sphi %s712_s16, %s18_s16   ;;  %s677_s15 = sphi %s710_s15, %s876_s15   ;;  %s673_s14 = sphi %s708_s14, %s875_s14   ;;  %s669_s13 = sphi %s706_s13, %s874_s13   ;;  %s665_s12 = sphi %s704_s12, %s873_s12   ;;  %s661_s11 = sphi %s702_s11, %s872_s11   ;;  %s657_s10 = sphi %s700_s10, %s871_s10   ;;  %s653_s9 = sphi %s698_s9, %s870_s9  }
   0x8   : > { %s27_s19 = sadd.s32 1, %s673_s14  ;;  %s30_s20 = sadd.s32 1, %s677_s15 }
   0x9   : > { %p28_p0 = scmp.ge.s32.totalorder %s27_s19, 2  ;;  %s39_s21 = sadd.s32 1, %s661_s11 }
   0xa   : > { %p46_p1 = scmp.ne.s32.totalorder %s661_s11, %s657_s10  ;;  %p47_p2 = scmp.eq.s32.totalorder %s681_s16, 0 }
   0xb   : > { %s878_s19 = smov (%p28_p0, %s27_s19), 0  ;;  %s880_s20 = smov (!%p28_p0, %s30_s20), %s677_s15 }
   0xc   : > { %s35_s22 = ssub.s32 %s673_s14, %s878_s19  ;;  %p751_p3 = por %p47_p2, %p46_p1 }
   0xd   : > { %p32_p4 = scmp.ge.s32.totalorder %s880_s20, 2  ;;  %p52_p5 = scmp.ne.s32.totalorder %s657_s10, %s653_s9 }
   0xe   : > { %p53_p6 = scmp.eq.s32.totalorder %s449_s17, 0  ;;  %p99_p7 = scmp.eq.s32.totalorder %s449_s17, 3 }
   0xf   : > { %s882_s20 = smov (%p32_p4, %s880_s20), 0  ;;  %p105_p10 = scmp.eq.s32.totalorder %s450_s18, 3 }
  0x10   : > { %p759_p8 = por %p53_p6, %p52_p5  ;;  %p763_p9 = por %p99_p7, %p46_p1 }
  0x11   : > { %s34_s26 = ssub.s32 %s677_s15, %s882_s20  ;;  %p769_p12 = por %p105_p10, %p52_p5 }
  0x12   : > { %s36_s27 = sor.u32 %s35_s22, %s34_s26  ;;  %p487_p13 = scmp.lt.s32.totalorder %s681_s16, 4 }
  0x13   : > { %p37_p11 = scmp.eq.s32.totalorder %s36_s27, 0  ;;  %s128_s29 = sand.u32 1, %s661_s11  }
  0x14   : > { %s470_s3 = smul.u32 24, %s128_s29  ;;  %p781_p0 = pnand %p487_p13, %p751_p3 }
  0x15   : > { %s776_s30 = scalar_select %p37_p11, %s661_s11, %s39_s21  }
  0x16   : > { %s133_s4 = smul.u32 6, %s673_s14  ;;  %s132_s7 = scalar_lea.vmem [#allocation2], %s470_s3 }
  0x17   : > { %s471_s6 = smul.u32 12, %s677_s15  ;;  %s143_s8 = sshll.u32 %s132_s7, 4  ;;  %s144_s8 = int_to_ptr.vmem [resolvable:$true] %s143_s8 }
  0x18   : > { %p454_p1 = scmp.ge.s32.totalorder %s681_s16, 1  ;;  %p148_p2 = scmp.lt.s32.totalorder %s681_s16, 5 }
  0x19   : > { %s137_s17 = sadd.s32 %s471_s6, %s133_s4  ;;  %s129_s23 = scalar_lea.sflag [#allocation3], %s128_s29 }
  0x1a   : > { %s453_s18 = sshll.u32 %s137_s17, 2  ;;  %p149_p4 = pnand %p454_p1, %p148_p2 }
  0x1b   : > { %s139_s21 = scalar_lea.hbm %s862_s0, %s453_s18  ;;  %s794_s3 = sand.u32 (!%p149_p4), 1, %s657_s10  }
  0x1c   : > { %s141_s27 = sshll.u32 %s139_s21, 4  ;;  %152 = sbr.rel (%p149_p4) target bundleno = 184 (0xb8), region = 28  ;;  %s142_s27 = int_to_ptr.hbm [resolvable:$true] %s141_s27 }
  0x1d   : > { %482 = dma.hbm_to_vmem [thread:$0]  (!%p781_p0), %s142_s27, 384, %s144_s8, %s129_s23  }
  0x1e   : > { %s472_s4 = smul.u32 (!%p149_p4), 24, %s794_s3  ;;  %s155_s6 = scalar_lea.sflag (!%p149_p4), [#allocation3], %s794_s3 }
  0x20   : > { %s158_s7 = scalar_lea.vmem (!%p149_p4), [#allocation2], %s472_s4 }
  0x21   : > { %644 = dma.done.wait (%p759_p8), %s155_s6, 384  }
  0x22   : > { %646 = vsyncadd (%p759_p8), %s155_s6, 4294966912  ;;  %v183_v0 = vld [vmem:[%s158_s7] sm:$0xff]  ;;  %v185_v1 = vld [vmem:[%s158_s7 + $0x10] sm:$0xff]  ;;  %vm204_vm0 = vcmask 1043456   ;;  %vm200_vm1 = vcmask 31744   ;;  %s473_s24 = smul.u32 48, %s794_s3 }
  0x23   : > { %189 = vst [vmem:[#allocation1] ss:$2 sm:$0xff] %v183_v0  ;;  %v184_v2 = vld [vmem:[%s158_s7 + $0x8] sm:$0xff]  ;;  %v182_v3 = vld [vmem:[%s863_s1] sm:$0xff]  ;;  %s351_s8 = smul.u32 6, %s665_s12  ;;  %s344_s12 = scalar_lea.sflag [#allocation4], %s794_s3 }
  0x24   : > { %193 = vst [vmem:[#allocation1 + $0x20] ss:$2 sm:$0xff] %v185_v1  ;;  %s474_s17 = smul.u32 12, %s669_s13  ;;  %s179_s22 = scalar_lea.vmem [#allocation5], %s473_s24 }
  0x25   : > { %191 = vst [vmem:[#allocation1 + $0x10] ss:$2 sm:$0xff] %v184_v2  ;;  %s359_s4 = sshll.u32 %s179_s22, 4  ;;  %s603_s24 = scalar_lea.hbm %s864_s2, 192  ;;  %s360_s4 = int_to_ptr.vmem [resolvable:$true] %s359_s4 }
  0x26   : > { %s355_s18 = sadd.s32 %s474_s17, %s351_s8 }
  0x27   : > { %s467_s26 = sshll.u32 %s355_s18, 3 }
  0x28   : > { %s357_s23 = scalar_lea.hbm %s864_s2, %s467_s26 }
  0x29   : > { %s361_s6 = sshll.u32 %s357_s23, 4  ;;  %s362_s6 = int_to_ptr.hbm [resolvable:$true] %s361_s6 }
  0x2a   : > { %v194_v4 = vld.sshfl [vmem:[#allocation1] sm:$0xff pattern:$0x75316420]  ;;  %v195_v5 = vld.sshfl [vmem:[#allocation1 + $0x8] sm:$0xff pattern:$0x75316420] }
  0x2b   : > { %455 = vmatpush.msk.msra.mxu0 %vm204_vm0, %v194_v4  ;;  %457 = vmatpush.msk.msra.mxu1 %vm204_vm0, %v195_v5  ;;  %v198_v6 = vld.sshfl [vmem:[#allocation1 + $0x20] sm:$0xff pattern:$0x75316420]  ;;  %v199_v7 = vld.sshfl [vmem:[#allocation1 + $0x28] sm:$0xff pattern:$0x75316420] }
  0x2c   : > { %456 = vmatmul.msk.f32.vlgmr.msra.gmra.mxu0 %vm200_vm1, %v182_v3  ;;  %458 = vmatmul.msk.f32.vlgmr.msra.gmra.mxu1 %vm200_vm1, %v182_v3  ;;  %v196_v8 = vld.sshfl [vmem:[#allocation1 + $0x10] sm:$0xff pattern:$0x75316420]  ;;  %v197_v9 = vld.sshfl [vmem:[#allocation1 + $0x18] sm:$0xff pattern:$0x75316420] }
  0x2d   : > { %463 = vmatpush.msk.msrb.mxu0 %vm204_vm0, %v198_v6  ;;  %465 = vmatpush.msk.msrb.mxu1 %vm204_vm0, %v199_v7  ;;  %s597_s13 = sshra.s32 %s362_s6, 4  ;;  %s598_s13 = int_to_ptr.hbm [resolvable:$true] %s597_s13 }
  0x2e   : > { %459 = vmatpush.msk.msra.mxu2 %vm204_vm0, %v196_v8  ;;  %461 = vmatpush.msk.msra.mxu3 %vm204_vm0, %v197_v9  ;;  %s599_s7 = scalar_lea.hbm %s598_s13, 48  ;;  %p604_p7 = scmp.lt.s32.totalorder %s598_s13, %s864_s2 }
  0x2f   : > { %460 = vmatmul.msk.f32.vlgmr.msra.gmra.mxu2 %vm200_vm1, %v182_v3  ;;  %462 = vmatmul.msk.f32.vlgmr.msra.gmra.mxu3 %vm200_vm1, %v182_v3  ;;  %p600_p3 = scmp.ne.s32.totalorder %s598_s13, %s599_s7  ;;  %p605_p8 = scmp.lt.s32.totalorder %s603_s24, %s599_s7 }
  0x31   : > { %p601_p5 = pnand %p600_p3, %p763_p9  ;;  %p606_p10 = por %p605_p8, %p604_p7 }
  0x33   : > { %p602_p6 = pneg %p601_p5 }
  0x34   : > { %464 = vmatmul.msk.f32.vlgmr.msrb.gmra.mxu0 %vm200_vm1, %v182_v3  ;;  %466 = vmatmul.msk.f32.vlgmr.msrb.gmra.mxu1 %vm200_vm1, %v182_v3 }
  0x35   : > { %p607_p11 = pnand %p606_p10, %p602_p6 }
  0xa9   : > { %v234_v10 = vpop.f32.mrf.mxu0  ;;  %v254_v11 = vpop.f32.mrf.mxu1 }
  0xaa   : > { %337 = vst [vmem:[%s179_s22] sm:$0xff] %v234_v10 }
  0xab   : > { %338 = vst [vmem:[%s179_s22 + $0x8] sm:$0xff] %v254_v11 }
  0xb1   : > { %v314_v12 = vpop.f32.mrf.mxu0  ;;  %v334_v13 = vpop.f32.mrf.mxu1 }
  0xb2   : > { %v274_v14 = vpop.f32.mrf.mxu2  ;;  %v294_v15 = vpop.f32.mrf.mxu3  ;;  %341 = vst [vmem:[%s179_s22 + $0x20] sm:$0xff] %v314_v12 }
  0xb3   : > { %339 = vst [vmem:[%s179_s22 + $0x10] sm:$0xff] %v274_v14 }
  0xb4   : > { %340 = vst [vmem:[%s179_s22 + $0x18] sm:$0xff] %v294_v15 }
  0xb5   : > { %342 = vst [vmem:[%s179_s22 + $0x28] sm:$0xff] %v334_v13 }
  0xb6   : > { %610 = shalt.err (!%p607_p11)
}
  0xb7   : > { %477 = dma.vmem_to_hbm [thread:$0]  (%p763_p9), %s360_s4, 768, %s362_s6, %s344_s12  }
  0xb8 PF: > { %p488_p13 = scmp.ge.s32.totalorder %s681_s16, 2  ;;  %s373_s3 = sand.u32 1, %s653_s9  }
  0xb9   : > { %s374_s18 = scalar_lea.sflag [#allocation4], %s373_s3 }
  0xba   : > { %p484_p0 = pnand %p488_p13, %p769_p12 }
  0xbc   : > { %p485_p1 = pneg %p484_p0 }
  0xbe   : > { %648 = dma.done.wait (%p485_p1), %s374_s18, 768  }
  0xbf   : > { %650 = vsyncadd (%p485_p1), %s374_s18, 4294966528  ;;  %s18_s16 = sadd.s32 1, %s681_s16   ;;  %s870_s9 = smov %s657_s10 }
  0xc0   : > { %p15_p2 = scmp.ge.s32.totalorder %s18_s16, 6   ;;  %s871_s10 = smov %s661_s11 }
  0xc1   : > { %s872_s11 = smov %s776_s30  ;;  %s873_s12 = smov %s673_s14 }
  0xc2   : > { %s874_s13 = smov %s677_s15  ;;  %s875_s14 = smov %s878_s19 }
  0xc3   : > { %s876_s15 = smov %s882_s20  ;;  %17 = sbr.rel (!%p15_p2) target bundleno = 7 (0x7), region = 75 }
  0xc8   :  { %380 = vsyncpa [#allocation3], 1 }
  0xc9   :  { %382 = vsyncpa [#allocation3 + $0x1], 1 }
  0xca   :  { %383 = vsyncpa [#allocation4], 1 }
  0xcb   :  { %385 = vsyncpa [#allocation4 + $0x1], 1 }

</bundles_post_ra>
